<compile_context>
chip_gen: v5e
topology: v5e:2x2
jax: 0.10.0
libtpu: 0.0.40
codegen_flags: <defaults>
</compile_context>

<pallas_src>
import functools

import jax
import jax.numpy as jnp
from jax.experimental import pallas as pl
from jax.experimental.pallas import tpu as pltpu

# ----------------------------- model dims -----------------------------------
BATCH = 2
SEQ = 8
DIM_MODEL = 32
HIDDEN = 64
LN_EPS = 1e-5


# ----------------------------- kernel ----------------------------------------
def ffn_kernel(x_ref, w1_ref, b1_ref, w2_ref, b2_ref, g_ref, be_ref, o_ref,
               *, use_bf16_matmul: bool):
    """Fused position-wise FFN over one (TILE_N, D) row tile.

    Weights/biases/LN params are whole-array resident blocks (constant index_map).
    """
    x = x_ref[...].astype(jnp.float32)                     # (TILE_N, D), f32 math

    if use_bf16_matmul:
        # 2x MXU rate + half the operand bytes on v6e/v7x; accumulate in f32.
        xm = x.astype(jnp.bfloat16)
        w1 = w1_ref[...].astype(jnp.bfloat16)
        w2 = w2_ref[...].astype(jnp.bfloat16)
    else:
        xm, w1, w2 = x, w1_ref[...], w2_ref[...]

    # fc1 + ReLU  (elementwise kept in f32 -- required on v5e, cheap everywhere)
    h = jnp.dot(xm, w1, preferred_element_type=jnp.float32) + b1_ref[...]
    h = jnp.maximum(h, 0.0)                                 # (TILE_N, H)
    if use_bf16_matmul:
        h = h.astype(jnp.bfloat16)

    # fc2 + dropout(p=0.0) (identity) + residual
    out = jnp.dot(h, w2, preferred_element_type=jnp.float32) + b2_ref[...]
    out = out + x                                           # (TILE_N, D)

    # LayerNorm (PyTorch semantics: biased variance, eps inside rsqrt, affine).
    # One-pass stats: mu = E[x], var = E[x^2] - mu^2, all in f32; gamma folded
    # into the rsqrt scale so there is a single full-width multiply.
    inv_d = 1.0 / out.shape[-1]
    s1 = jnp.sum(out, axis=-1, keepdims=True)
    s2 = jnp.sum(out * out, axis=-1, keepdims=True)
    mu = s1 * inv_d
    var = s2 * inv_d - mu * mu
    scale = jax.lax.rsqrt(var + LN_EPS) * g_ref[...]        # (TILE_N,1)*(1,D)->(TILE_N,D)
    o_ref[...] = ((out - mu) * scale + be_ref[...]).astype(o_ref.dtype)


# ----------------------------- tile chooser -----------------------------------
def _choose_row_tile(n, d, h, *, bytes_per_el=4, vmem_budget=24 << 20, max_tile=1024):
    """Pick a row tile that is a multiple of 8 and fits a conservative VMEM budget.

    Budget is sized for the smallest generation (v7x: ~32 MiB scoped per TC),
    accounting for double-buffered x/out tiles, the hidden activation, and the
    resident weights/biases/LN params.
    """
    if n <= max_tile:
        return n                                   # single / few blocks; full-dim ok
    per_row = (2 * 2 * d + h) * bytes_per_el       # 2 bufs x (x + out) + hidden
    weights = (2 * d * h + 2 * h + 4 * d) * bytes_per_el
    tile = min(max_tile, (vmem_budget - weights) // per_row)
    return max(8, (tile // 8) * 8)


# ----------------------------- wrapper ----------------------------------------
def position_wise_feed_forward(x, w1, b1, w2, b2, gamma, beta,
                               *, use_bf16_matmul: bool = False):
    B, L, D = x.shape
    H = w1.shape[1]
    N = B * L
    xf = x.reshape(N, D)            # flatten batch*seq -> one row slab (row-major)

    tn = _choose_row_tile(N, D, H)
    grid = (pl.cdiv(N, tn),)

    kernel = functools.partial(ffn_kernel, use_bf16_matmul=use_bf16_matmul)

    out = pl.pallas_call(
        kernel,
        out_shape=jax.ShapeDtypeStruct((N, D), x.dtype),
        grid=grid,
        in_specs=[
            pl.BlockSpec((tn, D), lambda i: (i, 0)),   # x: row-tiled, pipelined
            pl.BlockSpec((D, H), lambda i: (0, 0)),    # w1: resident across steps
            pl.BlockSpec((1, H), lambda i: (0, 0)),    # b1
            pl.BlockSpec((H, D), lambda i: (0, 0)),    # w2
            pl.BlockSpec((1, D), lambda i: (0, 0)),    # b2
            pl.BlockSpec((1, D), lambda i: (0, 0)),    # gamma
            pl.BlockSpec((1, D), lambda i: (0, 0)),    # beta
        ],
        out_specs=pl.BlockSpec((tn, D), lambda i: (i, 0)),
        # xf is a temporary (never reused) -> its HBM buffer can back the output.
        input_output_aliases={0: 0},
        compiler_params=pltpu.CompilerParams(
            dimension_semantics=("parallel",),         # rows independent; 2 TCs on v7x
        ),
    )(xf, w1, b1, w2, b2, gamma, beta)
    return out.reshape(B, L, D)


# ----------------------------- pure-JAX reference -----------------------------
def ffn_reference(x, w1, b1, w2, b2, gamma, beta):
    h = jnp.maximum(x @ w1 + b1, 0.0)
    out = h @ w2 + b2 + x
    mu = jnp.mean(out, axis=-1, keepdims=True)
    var = jnp.mean((out - mu) ** 2, axis=-1, keepdims=True)
    return (out - mu) / jnp.sqrt(var + LN_EPS) * gamma + beta


# ----------------------------- main -------------------------------------------
if __name__ == "__main__":
    key = jax.random.PRNGKey(0)
    ks = jax.random.split(key, 8)

    def w(k, shape, scale=0.1):
        return jax.random.normal(k, shape, dtype=jnp.float32) * scale

    # Linear weights stored as (in_features, out_features) so the kernel does x @ W + b.
    w1 = w(ks[0], (DIM_MODEL, HIDDEN))
    b1 = w(ks[1], (1, HIDDEN))
    w2 = w(ks[2], (HIDDEN, DIM_MODEL))
    b2 = w(ks[3], (1, DIM_MODEL))
    gamma = jnp.ones((1, DIM_MODEL), jnp.float32)
    beta = jnp.zeros((1, DIM_MODEL), jnp.float32)

    x = jax.random.normal(ks[4], (BATCH, SEQ, DIM_MODEL), dtype=jnp.float32)

    # Reference first (the kernel's flattened input buffer is marked aliasable).
    ref = jax.block_until_ready(ffn_reference(x, w1, b1, w2, b2, gamma, beta))

    fwd = jax.jit(position_wise_feed_forward)
    out = jax.block_until_ready(fwd(x, w1, b1, w2, b2, gamma, beta))

    assert out.shape == (BATCH, SEQ, DIM_MODEL), out.shape
    err = float(jnp.max(jnp.abs(out - ref)))
    assert jnp.allclose(out, ref, atol=1e-4, rtol=1e-4), err

    print("KERNEL_OK")
</pallas_src>

<mosaic_0001>
module attributes {stable_mosaic.version = 11 : i64} {
  func.func @ffn_kernel(%arg0: i32, %arg1: memref<16x32xf32, #tpu.memory_space<vmem>>, %arg2: memref<32x64xf32, #tpu.memory_space<vmem>>, %arg3: memref<1x64xf32, #tpu.memory_space<vmem>>, %arg4: memref<64x32xf32, #tpu.memory_space<vmem>>, %arg5: memref<1x32xf32, #tpu.memory_space<vmem>>, %arg6: memref<1x32xf32, #tpu.memory_space<vmem>>, %arg7: memref<1x32xf32, #tpu.memory_space<vmem>>, %arg8: memref<16x32xf32, #tpu.memory_space<vmem>>) attributes {dimension_semantics = [#tpu.dimension_semantics<parallel>], iteration_bounds = array<i64: 1>, scalar_prefetch = 0 : i64, scratch_operands = 0 : i64, tpu.core_type = #tpu.core_type<tc>, window_params = [{transform_indices = @transform_0, window_bounds = array<i64: 16, 32>}, {pipeline_mode = #tpu.pipeline_mode<synchronous>, transform_indices = @transform_1, window_bounds = array<i64: 32, 64>}, {pipeline_mode = #tpu.pipeline_mode<synchronous>, transform_indices = @transform_2, window_bounds = array<i64: 1, 64>}, {pipeline_mode = #tpu.pipeline_mode<synchronous>, transform_indices = @transform_3, window_bounds = array<i64: 64, 32>}, {pipeline_mode = #tpu.pipeline_mode<synchronous>, transform_indices = @transform_4, window_bounds = array<i64: 1, 32>}, {pipeline_mode = #tpu.pipeline_mode<synchronous>, transform_indices = @transform_5, window_bounds = array<i64: 1, 32>}, {pipeline_mode = #tpu.pipeline_mode<synchronous>, transform_indices = @transform_6, window_bounds = array<i64: 1, 32>}, {transform_indices = @transform_7, window_bounds = array<i64: 16, 32>}]} {
    %c0 = arith.constant 0 : index
    %c0_0 = arith.constant 0 : index
    %0 = vector.load %arg1[%c0, %c0_0] : memref<16x32xf32, #tpu.memory_space<vmem>>, vector<16x32xf32>
    %c0_1 = arith.constant 0 : index
    %c0_2 = arith.constant 0 : index
    %1 = vector.load %arg2[%c0_1, %c0_2] : memref<32x64xf32, #tpu.memory_space<vmem>>, vector<32x64xf32>
    %c0_3 = arith.constant 0 : index
    %c0_4 = arith.constant 0 : index
    %2 = vector.load %arg4[%c0_3, %c0_4] : memref<64x32xf32, #tpu.memory_space<vmem>>, vector<64x32xf32>
    %cst = arith.constant dense<0.000000e+00> : vector<16x64xf32>
    %3 = tpu.matmul %0, %1, %cst {dimension_numbers = #tpu.dot_dimension_numbers<[1], [0], [0], [1], [0, 0, 1, 1], [], []>} : vector<16x32xf32>, vector<32x64xf32>, vector<16x64xf32> -> vector<16x64xf32>
    %c0_5 = arith.constant 0 : index
    %c0_6 = arith.constant 0 : index
    %4 = vector.load %arg3[%c0_5, %c0_6] : memref<1x64xf32, #tpu.memory_space<vmem>>, vector<1x64xf32>
    %5 = vector.broadcast %4 : vector<1x64xf32> to vector<16x64xf32>
    %6 = arith.addf %3, %5 : vector<16x64xf32>
    %cst_7 = arith.constant 0.000000e+00 : f32
    %7 = vector.broadcast %cst_7 : f32 to vector<16x64xf32>
    %8 = arith.maximumf %6, %7 : vector<16x64xf32>
    %cst_8 = arith.constant dense<0.000000e+00> : vector<16x32xf32>
    %9 = tpu.matmul %8, %2, %cst_8 {dimension_numbers = #tpu.dot_dimension_numbers<[1], [0], [0], [1], [0, 0, 1, 1], [], []>} : vector<16x64xf32>, vector<64x32xf32>, vector<16x32xf32> -> vector<16x32xf32>
    %c0_9 = arith.constant 0 : index
    %c0_10 = arith.constant 0 : index
    %10 = vector.load %arg5[%c0_9, %c0_10] : memref<1x32xf32, #tpu.memory_space<vmem>>, vector<1x32xf32>
    %11 = vector.broadcast %10 : vector<1x32xf32> to vector<16x32xf32>
    %12 = arith.addf %9, %11 : vector<16x32xf32>
    %13 = arith.addf %12, %0 : vector<16x32xf32>
    %cst_11 = arith.constant dense<0.000000e+00> : vector<16xf32>
    %14 = vector.multi_reduction <add>, %13, %cst_11 [1] : vector<16x32xf32> to vector<16xf32>
    %15 = vector.shape_cast %14 : vector<16xf32> to vector<16x1xf32>
    %16 = arith.mulf %13, %13 : vector<16x32xf32>
    %cst_12 = arith.constant dense<0.000000e+00> : vector<16xf32>
    %17 = vector.multi_reduction <add>, %16, %cst_12 [1] : vector<16x32xf32> to vector<16xf32>
    %18 = vector.shape_cast %17 : vector<16xf32> to vector<16x1xf32>
    %cst_13 = arith.constant 3.125000e-02 : f32
    %19 = vector.broadcast %cst_13 : f32 to vector<16x1xf32>
    %20 = arith.mulf %15, %19 : vector<16x1xf32>
    %cst_14 = arith.constant 3.125000e-02 : f32
    %21 = vector.broadcast %cst_14 : f32 to vector<16x1xf32>
    %22 = arith.mulf %18, %21 : vector<16x1xf32>
    %23 = arith.mulf %20, %20 : vector<16x1xf32>
    %24 = arith.subf %22, %23 : vector<16x1xf32>
    %cst_15 = arith.constant 9.99999974E-6 : f32
    %25 = vector.broadcast %cst_15 : f32 to vector<16x1xf32>
    %26 = arith.addf %24, %25 : vector<16x1xf32>
    %27 = math.rsqrt %26 : vector<16x1xf32>
    %c0_16 = arith.constant 0 : index
    %c0_17 = arith.constant 0 : index
    %28 = vector.load %arg6[%c0_16, %c0_17] : memref<1x32xf32, #tpu.memory_space<vmem>>, vector<1x32xf32>
    %29 = vector.broadcast %27 : vector<16x1xf32> to vector<16x32xf32>
    %30 = vector.broadcast %28 : vector<1x32xf32> to vector<16x32xf32>
    %31 = arith.mulf %29, %30 : vector<16x32xf32>
    %32 = vector.broadcast %20 : vector<16x1xf32> to vector<16x32xf32>
    %33 = arith.subf %13, %32 : vector<16x32xf32>
    %34 = arith.mulf %33, %31 : vector<16x32xf32>
    %c0_18 = arith.constant 0 : index
    %c0_19 = arith.constant 0 : index
    %35 = vector.load %arg7[%c0_18, %c0_19] : memref<1x32xf32, #tpu.memory_space<vmem>>, vector<1x32xf32>
    %36 = vector.broadcast %35 : vector<1x32xf32> to vector<16x32xf32>
    %37 = arith.addf %34, %36 : vector<16x32xf32>
    %c0_20 = arith.constant 0 : index
    %c0_21 = arith.constant 0 : index
    %38 = vector.load %arg8[%c0_20, %c0_21] : memref<16x32xf32, #tpu.memory_space<vmem>>, vector<16x32xf32>
    tpu.vector_store %arg8[%c0_20, %c0_21], %37 {strides = array<i32>} : memref<16x32xf32, #tpu.memory_space<vmem>>, vector<16x32xf32>,
    return
  }
  func.func @transform_0(%arg0: i32) -> (i32, i32) {
    %c0_i32 = arith.constant 0 : i32
    %c0_i32_0 = arith.constant 0 : i32
    return %arg0, %c0_i32 : i32, i32
  }
  func.func @transform_1(%arg0: i32) -> (i32, i32) {
    %c0_i32 = arith.constant 0 : i32
    %c0_i32_0 = arith.constant 0 : i32
    %c0_i32_1 = arith.constant 0 : i32
    return %c0_i32, %c0_i32_0 : i32, i32
  }
  func.func @transform_2(%arg0: i32) -> (i32, i32) {
    %c0_i32 = arith.constant 0 : i32
    %c0_i32_0 = arith.constant 0 : i32
    %c0_i32_1 = arith.constant 0 : i32
    return %c0_i32, %c0_i32_0 : i32, i32
  }
  func.func @transform_3(%arg0: i32) -> (i32, i32) {
    %c0_i32 = arith.constant 0 : i32
    %c0_i32_0 = arith.constant 0 : i32
    %c0_i32_1 = arith.constant 0 : i32
    return %c0_i32, %c0_i32_0 : i32, i32
  }
  func.func @transform_4(%arg0: i32) -> (i32, i32) {
    %c0_i32 = arith.constant 0 : i32
    %c0_i32_0 = arith.constant 0 : i32
    %c0_i32_1 = arith.constant 0 : i32
    return %c0_i32, %c0_i32_0 : i32, i32
  }
  func.func @transform_5(%arg0: i32) -> (i32, i32) {
    %c0_i32 = arith.constant 0 : i32
    %c0_i32_0 = arith.constant 0 : i32
    %c0_i32_1 = arith.constant 0 : i32
    return %c0_i32, %c0_i32_0 : i32, i32
  }
  func.func @transform_6(%arg0: i32) -> (i32, i32) {
    %c0_i32 = arith.constant 0 : i32
    %c0_i32_0 = arith.constant 0 : i32
    %c0_i32_1 = arith.constant 0 : i32
    return %c0_i32, %c0_i32_0 : i32, i32
  }
  func.func @transform_7(%arg0: i32) -> (i32, i32) {
    %c0_i32 = arith.constant 0 : i32
    %c0_i32_0 = arith.constant 0 : i32
    return %arg0, %c0_i32 : i32, i32
  }
}

</mosaic_0001>

<bundles_post_ra>
// kernel: position_wise_feed_forward.1
= control target key start
LH: loop header
LB: loop body
LE: loop exit
PB: predicated region body
PF: predicated region fallthrough
CT: control target
= control target key end

     0   :  { %vm44_vm0 = vcmask 261120   ;;  %vm80_vm1 = vcmask 523264   ;;  %s310_s1 = inlined_call_operand.vmem [shape: f32[32,64], index: 1, kind: input, shape index: {}]   ;;  %s311_s3 = inlined_call_operand.vmem [shape: f32[64,32], index: 3, kind: input, shape index: {}]   ;;  %s312_s0 = inlined_call_operand.vmem [shape: f32[16,32], index: 0, kind: input, shape index: {}, may-alias: {0,7}]   ;;  %s313_s2 = inlined_call_operand.vmem [shape: f32[1,64], index: 2, kind: input, shape index: {}]   ;;  %s314_s4 = inlined_call_operand.vmem [shape: f32[1,32], index: 4, kind: input, shape index: {}]   ;;  %s315_s5 = inlined_call_operand.vmem [shape: f32[1,32], index: 5, kind: input, shape index: {}]   ;;  %s316_s6 = inlined_call_operand.vmem [shape: f32[1,32], index: 6, kind: input, shape index: {}]   ;;  %s317_s7 = inlined_call_operand.vmem [shape: f32[16,32], index: 7, kind: output, shape index: {}, may-alias: {0,7}]  }
   0x1   :  { %v31_v0 = vld [vmem:[%s310_s1 + $0x18] sm:$0xff]  ;;  %v30_v1 = vld [vmem:[%s310_s1 + $0x10] sm:$0xff]  ;;  %v29_v2 = vld [vmem:[%s310_s1 + $0x8] sm:$0xff] }
   0x2   :  { %63 = vmatpush.msra.mxu0 %v31_v0  ;;  %182 = vmatpush.msra.mxu3 %v31_v0  ;;  %v39_v3 = vld [vmem:[%s311_s3 + $0x38] sm:$0xff]  ;;  %v38_v4 = vld [vmem:[%s311_s3 + $0x30] sm:$0xff]  ;;  %v28_v5 = vld [vmem:[%s310_s1] sm:$0xff] }
   0x3   :  { %95 = vmatpush.msra.mxu1 %v39_v3  ;;  %186 = vmatpush.msra.mxu2 %v39_v3  ;;  %v26_v6 = vld [vmem:[%s312_s0] sm:$0xff]  ;;  %v27_v7 = vld [vmem:[%s312_s0 + $0x8] sm:$0xff]  ;;  %v35_v10 = vld [vmem:[%s311_s3 + $0x18] sm:$0xff] }
   0x4   :  { %64 = vmatpush.msra.mxu0 %v30_v1  ;;  %183 = vmatpush.msra.mxu3 %v30_v1  ;;  %v37_v8 = vld [vmem:[%s311_s3 + $0x28] sm:$0xff]  ;;  %v36_v9 = vld [vmem:[%s311_s3 + $0x20] sm:$0xff]  ;;  %v34_v11 = vld [vmem:[%s311_s3 + $0x10] sm:$0xff] }
   0x5   :  { %96 = vmatpush.msra.mxu1 %v38_v4  ;;  %187 = vmatpush.msra.mxu2 %v38_v4  ;;  %v33_v12 = vld [vmem:[%s311_s3 + $0x8] sm:$0xff]  ;;  %v32_v13 = vld [vmem:[%s311_s3] sm:$0xff] }
   0x6   :  { %65 = vmatpush.msra.mxu0 %v29_v2  ;;  %184 = vmatpush.msra.mxu3 %v29_v2  ;;  %v194_v14 = vld [vmem:[%s313_s2] ss:$0 sm:$0xff] }
   0x7   :  { %97 = vmatpush.msra.mxu1 %v37_v8  ;;  %188 = vmatpush.msra.mxu2 %v37_v8  ;;  %v195_v21 = vld [vmem:[%s314_s4] ss:$0 sm:$0xff] }
   0x8   :  { %66 = vmatpush.msra.mxu0 %v28_v5  ;;  %185 = vmatpush.msra.mxu3 %v28_v5  ;;  %v196_v53 = vld [vmem:[%s315_s5] ss:$0 sm:$0xff] }
   0x9   :  { %178 = vmatmul.msk.f32.vlgmr.msra.gmra.mxu0 %vm44_vm0, %v26_v6  ;;  %179 = vmatmul.msk.f32.vlgmr.msra.gmra.mxu3 %vm44_vm0, %v27_v7  ;;  %v197_v58 = vld [vmem:[%s316_s6] ss:$0 sm:$0xff] }
   0xa   :  { %98 = vmatpush.msra.mxu1 %v36_v9  ;;  %189 = vmatpush.msra.mxu2 %v36_v9 }
   0xc   :  { %99 = vmatpush.msra.mxu1 %v35_v10  ;;  %190 = vmatpush.msra.mxu2 %v35_v10 }
   0xe   :  { %100 = vmatpush.msra.mxu1 %v34_v11  ;;  %191 = vmatpush.msra.mxu2 %v34_v11 }
  0x10   :  { %101 = vmatpush.msra.mxu1 %v33_v12  ;;  %192 = vmatpush.msra.mxu2 %v33_v12 }
  0x12   :  { %102 = vmatpush.msra.mxu1 %v32_v13  ;;  %193 = vmatpush.msra.mxu2 %v32_v13 }
  0x86   :  { %v68_v15 = vpop.f32.mrf.mxu0 }
  0x87   :  { %v69_v16 = vadd.f32 %v194_v14, %v68_v15 }
  0x89   :  { %v74_v17 = vmax.f32 %v69_v16, 0.0 }
  0x8b   :  { %180 = vmatmul.msk.f32.vlgmr.msra.gmra.mxu1 %vm80_vm1, %v74_v17 }
  0x8c   :  { %v71_v18 = vpop.f32.mrf.mxu3 }
  0x8d   :  { %v72_v19 = vadd.f32 %v194_v14, %v71_v18 }
  0x8f   :  { %v75_v20 = vmax.f32 %v72_v19, 0.0 }
  0x91   :  { %181 = vmatmul.msk.f32.vlgmr.msra.gmra.mxu2 %vm80_vm1, %v75_v20 }
 0x108   :  { %v104_v22 = vpop.f32.mrf.mxu1 }
 0x109   :  { %v105_v23 = vadd.f32 %v195_v21, %v104_v22 }
 0x10b   :  { %v110_v24 = vadd.f32 %v105_v23, %v26_v6 }
 0x10d   :  { %v112_v25 = vsel %vm44_vm0, %v110_v24, 0.0  ;;  %v118_v26 = vmul.f32 %v110_v24, %v110_v24 }
 0x10e   :  { %113 = vadd.xlane.f32.xlu0 %v112_v25 }
 0x10f   :  { %v120_v27 = vsel %vm44_vm0, %v118_v26, 0.0 }
 0x110   :  { %121 = vadd.xlane.f32.xlu1 %v120_v27 }
 0x114   :  { %v107_v28 = vpop.f32.mrf.mxu2 }
 0x115   :  { %v108_v29 = vadd.f32 %v195_v21, %v107_v28 }
 0x117   :  { %v111_v30 = vadd.f32 %v108_v29, %v27_v7 }
 0x119   :  { %v115_v31 = vsel %vm44_vm0, %v111_v30, 0.0  ;;  %v119_v32 = vmul.f32 %v111_v30, %v111_v30 }
 0x11a   :  { %116 = vadd.xlane.f32.xlu0 %v115_v31 }
 0x11b   :  { %v123_v33 = vsel %vm44_vm0, %v119_v32, 0.0 }
 0x11c   :  { %124 = vadd.xlane.f32.xlu1 %v123_v33 }
 0x181   :  { %v114_v34 = vpop.xlane.xlu0 %113 }
 0x182   :  { %v126_v35 = vmul.f32 0.03125, %v114_v34 }
 0x183   :  { %v122_v36 = vpop.xlane.xlu1 %121 }
 0x184   :  { %v130_v37 = vmul.f32 %v126_v35, %v126_v35  ;;  %v128_v38 = vmul.f32 0.03125, %v122_v36  ;;  %v162_v57 = vsub.f32 %v110_v24, %v126_v35 }
 0x186   :  { %v132_v39 = vsub.f32 %v128_v38, %v130_v37 }
 0x188   :  { %v134_v40 = vadd.f32 1e-05, %v132_v39 }
 0x18a   :  { %198 = vrsqrt.f32 %v134_v40  ;;  %vm142_vm3 = vweird.f32 %v134_v40 }
 0x18d   :  { %v117_v41 = vpop.xlane.xlu0 %116 }
 0x18e   :  { %v127_v42 = vmul.f32 0.03125, %v117_v41 }
 0x18f   :  { %v125_v43 = vpop.xlane.xlu1 %124 }
 0x190   :  { %v199_v44 = vpop.eup %198  ;;  %v131_v45 = vmul.f32 %v127_v42, %v127_v42  ;;  %v129_v46 = vmul.f32 0.03125, %v125_v43  ;;  %v163_v4 = vsub.f32 %v111_v30, %v127_v42 }
 0x191   :  { %v137_v47 = vmul.f32 %v199_v44, %v134_v40  ;;  %vm143_vm2 = vweird.f32 %v199_v44 }
 0x192   :  { %v133_v48 = vsub.f32 %v129_v46, %v131_v45  ;;  %vm144_vm4 = vmor %vm142_vm3, %vm143_vm2 }
 0x193   :  { %v138_v49 = vmul.f32 %v199_v44, %v137_v47 }
 0x194   :  { %v135_v50 = vadd.f32 1e-05, %v133_v48 }
 0x195   :  { %v139_v51 = vmul.f32 0.5, %v138_v49 }
 0x196   :  { %200 = vrsqrt.f32 %v135_v50  ;;  %vm152_vm6 = vweird.f32 %v135_v50 }
 0x197   :  { %v140_v52 = vsub.f32 1.5, %v139_v51 }
 0x199   :  { %v141_v54 = vmul.f32 %v199_v44, %v140_v52 }
 0x19b   :  { %v145_v55 = vsel %vm144_vm4, %v199_v44, %v141_v54 }
 0x19c   :  { %v201_v56 = vpop.eup %200  ;;  %v160_v59 = vmul.f32 %v196_v53, %v145_v55 }
 0x19d   :  { %v147_v60 = vmul.f32 %v201_v56, %v135_v50  ;;  %vm153_vm5 = vweird.f32 %v201_v56 }
 0x19e   :  { %v164_v61 = vmul.f32 %v162_v57, %v160_v59  ;;  %vm154_vm7 = vmor %vm152_vm6, %vm153_vm5 }
 0x19f   :  { %v148_v62 = vmul.f32 %v201_v56, %v147_v60 }
 0x1a0   :  { %v170_v63 = vadd.f32 %v197_v58, %v164_v61 }
 0x1a1   :  { %v149_v0 = vmul.f32 0.5, %v148_v62 }
 0x1a2   :  { %172 = vst.msk [vmem:[%s317_s7] sm:$0xff] %vm44_vm0, %v170_v63 }
 0x1a3   :  { %v150_v1 = vsub.f32 1.5, %v149_v0 }
 0x1a5   :  { %v151_v2 = vmul.f32 %v201_v56, %v150_v1 }
 0x1a7   :  { %v155_v3 = vsel %vm154_vm7, %v201_v56, %v151_v2 }
 0x1a8   :  { %v161_v5 = vmul.f32 %v196_v53, %v155_v3 }
 0x1aa   :  { %v165_v6 = vmul.f32 %v163_v4, %v161_v5 }
 0x1ac   :  { %v171_v7 = vadd.f32 %v197_v58, %v165_v6 }
 0x1ae   :  { %173 = vst.msk [vmem:[%s317_s7 + $0x8] sm:$0xff] %vm44_vm0, %v171_v7 }

</bundles_post_ra>
